<compile_context>
chip_gen: v7x
topology: tpu7x:2x2x1
jax: 0.10.0
libtpu: 0.0.40
codegen_flags: <defaults>
</compile_context>

<pallas_src>
import functools

import jax
import jax.numpy as jnp
from jax.experimental import pallas as pl
from jax.experimental.pallas import tpu as pltpu


# ---------------------------------------------------------------------------
# helpers
# ---------------------------------------------------------------------------
def _round_up(n, m):
    return ((n + m - 1) // m) * m


def _choose_tl(L, max_tile_l):
    """Largest L-tile <= max_tile_l dividing L and multiple of 8 (sublane
    alignment for the output block).  Falls back to a single full-L tile."""
    for t in range(min(L, max_tile_l), 7, -1):
        if L % t == 0 and t % 8 == 0:
            return t
    return L


def _pad_w(w, cpi, cpo):
    """(k, cin, cout) -> zero-padded (k, cpi, cpo) (padded lanes stay zero)."""
    return jnp.pad(w, ((0, 0), (0, cpi - w.shape[1]), (0, cpo - w.shape[2])))


def _pad_b(b, cpo):
    return jnp.pad(b, (0, cpo - b.shape[0])).reshape(1, cpo)


# ---------------------------------------------------------------------------
# Fused whole-network kernel.
# One grid step (b, j) produces output rows [j*TL, (j+1)*TL) of the FINAL
# layer for batch b, recomputing the per-layer causal halo in VMEM.
# ---------------------------------------------------------------------------
def _make_tcn_kernel(layers, tl, total_halo, cout_last):
    """layers: list of dicts with keys k, d, cpo, has_down (static metadata)."""
    n_layers = len(layers)

    def kernel(xw_ref, *rest):
        o_ref = rest[-1]
        wrefs = rest[:-1]
        j = pl.program_id(1)

        # Input window: (total_halo + tl, cpi0).  Rows at global t < 0 are
        # already exact zeros (baked by the wrapper's jnp.pad), so the first
        # layer's conv1 needs no causal mask.
        act = xw_ref[0, 0]
        h_cur = total_halo
        wi = 0

        for li, lyr in enumerate(layers):
            k, d = lyr["k"], lyr["d"]
            hb1 = (k - 1) * d          # conv reach of one conv
            hb = 2 * hb1               # reach of the whole block
            n1 = h_cur - hb1 + tl      # rows of h (conv1 output)
            n2 = h_cur - hb + tl       # rows of the block output

            w1r, b1r, w2r, b2r = (wrefs[wi], wrefs[wi + 1],
                                  wrefs[wi + 2], wrefs[wi + 3])
            wi += 4
            if lyr["has_down"]:
                wdr, bdr = wrefs[wi], wrefs[wi + 1]
                wi += 2
            cd = w1r.dtype             # matmul input dtype (f32 or bf16)

            # ---- conv1 + bias + ReLU: k accumulated MXU dots (f32 acc) -----
            h = jnp.dot(act[0:n1, :].astype(cd), w1r[0],
                        preferred_element_type=jnp.float32)
            for t in range(1, k):
                h = h + jnp.dot(act[t * d:t * d + n1, :].astype(cd), w1r[t],
                                preferred_element_type=jnp.float32)
            h = jnp.maximum(h + b1r[...], 0.0)

            # conv2's input is zero-padded at global t < 0 in the reference.
            if hb1 > 0:
                r = jax.lax.broadcasted_iota(jnp.int32, (n1, 1), 0)
                h = jnp.where(r >= (h_cur - hb1) - j * tl, h, 0.0)

            # ---- conv2 + bias + ReLU --------------------------------------
            y = jnp.dot(h[0:n2, :].astype(cd), w2r[0],
                        preferred_element_type=jnp.float32)
            for t in range(1, k):
                y = y + jnp.dot(h[t * d:t * d + n2, :].astype(cd), w2r[t],
                                preferred_element_type=jnp.float32)
            y = jnp.maximum(y + b2r[...], 0.0)

            # ---- residual path + final ReLU -------------------------------
            xres = act[hb:, :]                       # (n2, cpi) block input
            if lyr["has_down"]:
                res = jnp.dot(xres.astype(cd), wdr[...],
                              preferred_element_type=jnp.float32) + bdr[...]
            else:
                res = xres                           # exact identity (f32)
            y = jnp.maximum(y + res, 0.0)

            h_next = h_cur - hb
            if li + 1 < n_layers:
                # Next block's conv1 sees this output zero-padded at t < 0.
                r2 = jax.lax.broadcasted_iota(jnp.int32, (n2, 1), 0)
                y = jnp.where(r2 >= h_next - j * tl, y, 0.0)
            act = y
            h_cur = h_next

        # Final block output is exactly tl rows; store only real channels
        # (no 128-lane padding on the single HBM write).
        o_ref[0] = act[:, :cout_last].astype(o_ref.dtype)

    return kernel


# ---------------------------------------------------------------------------
# TemporalConvNet forward (PyTorch NCL layout at the boundary)
# ---------------------------------------------------------------------------
def temporal_conv_net(x_ncl, all_params, kernel_size, dilations,
                      compute_dtype=jnp.float32, max_tile_l=512,
                      vmem_limit_bytes=None):
    B, C, L = x_ncl.shape
    k = kernel_size
    n_layers = len(all_params)
    assert len(dilations) == n_layers

    # Per-layer channel widths, padded to 128 lanes for in-kernel matmuls.
    cps = [_round_up(C, 128)]
    for p in all_params:
        cps.append(_round_up(p["w1"].shape[2], 128))

    halos = [2 * (k - 1) * d for d in dilations]     # per-block causal reach
    total_halo = sum(halos)                          # whole-net receptive reach
    tl = _choose_tl(L, max_tile_l)
    nl = L // tl                                     # keep B*nl >= 2 for v7x megacore

    # NCL -> NLC, pad channels, bake the causal zero padding, and cut
    # overlapping per-tile halo windows: window j holds exactly
    # (total_halo + tl) rows = global rows [j*tl - total_halo, (j+1)*tl).
    x = jnp.transpose(x_ncl, (0, 2, 1)).astype(jnp.float32)
    x = jnp.pad(x, ((0, 0), (total_halo, 0), (0, cps[0] - C)))
    xw = jnp.stack([x[:, jj * tl: jj * tl + total_halo + tl, :]
                    for jj in range(nl)], axis=1)    # (B, nl, H+tl, cp0)

    layers = []
    args = [xw]
    in_specs = [pl.BlockSpec((1, 1, total_halo + tl, cps[0]),
                             lambda b, j: (b, j, 0, 0))]
    for li, (p, d) in enumerate(zip(all_params, dilations)):
        cpi, cpo = cps[li], cps[li + 1]
        has_down = "wd" in p
        layers.append(dict(k=k, d=d, cpo=cpo, has_down=has_down))
        args += [
            _pad_w(p["w1"], cpi, cpo).astype(compute_dtype),   # (k, cpi, cpo)
            _pad_b(p["b1"], cpo),                              # (1, cpo) f32
            _pad_w(p["w2"], cpo, cpo).astype(compute_dtype),   # (k, cpo, cpo)
            _pad_b(p["b2"], cpo),
        ]
        in_specs += [
            pl.BlockSpec((k, cpi, cpo), lambda b, j: (0, 0, 0)),
            pl.BlockSpec((1, cpo), lambda b, j: (0, 0)),
            pl.BlockSpec((k, cpo, cpo), lambda b, j: (0, 0, 0)),
            pl.BlockSpec((1, cpo), lambda b, j: (0, 0)),
        ]
        if has_down:
            args += [_pad_w(p["wd"], cpi, cpo)[0].astype(compute_dtype),
                     _pad_b(p["bd"], cpo)]
            in_specs += [pl.BlockSpec((cpi, cpo), lambda b, j: (0, 0)),
                         pl.BlockSpec((1, cpo), lambda b, j: (0, 0))]

    cout = all_params[-1]["w1"].shape[2]
    kernel = _make_tcn_kernel(layers, tl, total_halo, cout)

    out = pl.pallas_call(
        kernel,
        out_shape=jax.ShapeDtypeStruct((B, L, cout), jnp.float32),
        grid=(B, nl),
        in_specs=in_specs,
        out_specs=pl.BlockSpec((1, tl, cout), lambda b, j: (b, j, 0)),
        compiler_params=pltpu.CompilerParams(
            dimension_semantics=("parallel", "parallel"),
            vmem_limit_bytes=vmem_limit_bytes),
    )(*args)
    return jnp.transpose(out, (0, 2, 1))             # NLC -> NCL


# ---------------------------------------------------------------------------
# Deterministic parameter construction (matches module __init__ shapes)
# ---------------------------------------------------------------------------
def init_tcn_params(key, num_inputs, num_channels, kernel_size):
    params = []
    for i, cout in enumerate(num_channels):
        cin = num_inputs if i == 0 else num_channels[i - 1]
        key, k1, k2, k3, k4, k5, k6 = jax.random.split(key, 7)
        p = {
            # stored as (k, Cin, Cout); PyTorch stores (Cout, Cin, k)
            "w1": 0.01 * jax.random.normal(k1, (kernel_size, cin, cout), jnp.float32),
            "b1": 0.01 * jax.random.normal(k2, (cout,), jnp.float32),
            "w2": 0.01 * jax.random.normal(k3, (kernel_size, cout, cout), jnp.float32),
            "b2": 0.01 * jax.random.normal(k4, (cout,), jnp.float32),
        }
        if cin != cout:
            p["wd"] = 0.01 * jax.random.normal(k5, (1, cin, cout), jnp.float32)
            p["bd"] = 0.01 * jax.random.normal(k6, (cout,), jnp.float32)
        params.append(p)
    return params


# ---------------------------------------------------------------------------
# Pure-jnp reference (mirrors PyTorch conv/pad/chomp/relu semantics)
# ---------------------------------------------------------------------------
def _ref_causal_conv(x_nlc, w, b, dilation):
    k = w.shape[0]
    L = x_nlc.shape[1]
    pad = (k - 1) * dilation
    xp = jnp.pad(x_nlc, ((0, 0), (pad, 0), (0, 0)))
    out = jnp.zeros((x_nlc.shape[0], L, w.shape[2]), jnp.float32) + b
    for j in range(k):
        out = out + jnp.einsum("blc,cd->bld",
                               xp[:, j * dilation:j * dilation + L, :], w[j])
    return out


def _ref_tcn(x_ncl, all_params, kernel_size, dilations):
    h = jnp.transpose(x_ncl, (0, 2, 1))
    for p, d in zip(all_params, dilations):
        res = _ref_causal_conv(h, p["wd"], p["bd"], 1) if "wd" in p else h
        a = jnp.maximum(_ref_causal_conv(h, p["w1"], p["b1"], d), 0.0)
        a = jnp.maximum(_ref_causal_conv(a, p["w2"], p["b2"], d), 0.0)
        h = jnp.maximum(a + res, 0.0)
    return jnp.transpose(h, (0, 2, 1))


# ---------------------------------------------------------------------------
if __name__ == "__main__":
    key = jax.random.PRNGKey(0)

    # ---- Test 1: small demo shapes, single L tile per batch ---------------
    B, C_IN, L = 2, 4, 16
    NUM_CHANNELS = [8, 8]
    KERNEL_SIZE = 2
    dil1 = [2 ** i for i in range(len(NUM_CHANNELS))]

    key, kx, kp = jax.random.split(key, 3)
    x = jax.random.normal(kx, (B, C_IN, L), jnp.float32)       # PyTorch NCL
    params = init_tcn_params(kp, C_IN, NUM_CHANNELS, KERNEL_SIZE)
    ref = _ref_tcn(x, params, KERNEL_SIZE, dil1)

    fwd32 = jax.jit(functools.partial(temporal_conv_net,
                                      kernel_size=KERNEL_SIZE,
                                      dilations=dil1,
                                      compute_dtype=jnp.float32))
    out32 = jax.block_until_ready(fwd32(x, params))
    assert out32.shape == (B, NUM_CHANNELS[-1], L)
    assert jnp.allclose(out32, ref, atol=1e-4, rtol=1e-3)

    # bf16 matmul-input variant (v5e/v6e/v7x MXU path); elementwise stays f32.
    fwd16 = jax.jit(functools.partial(temporal_conv_net,
                                      kernel_size=KERNEL_SIZE,
                                      dilations=dil1,
                                      compute_dtype=jnp.bfloat16))
    out16 = jax.block_until_ready(fwd16(x, params))
    assert jnp.allclose(out16, ref, atol=1e-2, rtol=1e-2)

    # ---- Test 2: multiple L tiles, receptive field < tile -----------------
    B2, C2, L2 = 2, 3, 64
    CH2, K2, dil2 = [16, 8], 3, [1, 2]
    key, kx2, kp2 = jax.random.split(key, 3)
    x2 = jax.random.normal(kx2, (B2, C2, L2), jnp.float32)
    params2 = init_tcn_params(kp2, C2, CH2, K2)
    ref2 = _ref_tcn(x2, params2, K2, dil2)

    fwd2 = jax.jit(functools.partial(temporal_conv_net, kernel_size=K2,
                                     dilations=dil2, max_tile_l=16))
    out2 = jax.block_until_ready(fwd2(x2, params2))
    assert out2.shape == (B2, CH2[-1], L2)
    assert jnp.allclose(out2, ref2, atol=1e-4, rtol=1e-3)

    # ---- Test 3: deep dilations, receptive field (28) > L tile (16) -------
    B3, C3, L3 = 2, 5, 64
    CH3, K3, dil3 = [8, 8, 8], 3, [1, 2, 4]
    key, kx3, kp3 = jax.random.split(key, 3)
    x3 = jax.random.normal(kx3, (B3, C3, L3), jnp.float32)
    params3 = init_tcn_params(kp3, C3, CH3, K3)
    ref3 = _ref_tcn(x3, params3, K3, dil3)

    fwd3 = jax.jit(functools.partial(temporal_conv_net, kernel_size=K3,
                                     dilations=dil3, max_tile_l=16))
    out3 = jax.block_until_ready(fwd3(x3, params3))
    assert out3.shape == (B3, CH3[-1], L3)
    assert jnp.allclose(out3, ref3, atol=1e-4, rtol=1e-3)

    print("KERNEL_OK")
</pallas_src>

<mosaic_0001>
module attributes {stable_mosaic.version = 11 : i64} {
  func.func @kernel(%arg0: i32, %arg1: i32, %arg2: memref<1x1x22x128xf32, #tpu.memory_space<vmem>>, %arg3: memref<2x128x128xf32, #tpu.memory_space<vmem>>, %arg4: memref<1x128xf32, #tpu.memory_space<vmem>>, %arg5: memref<2x128x128xf32, #tpu.memory_space<vmem>>, %arg6: memref<1x128xf32, #tpu.memory_space<vmem>>, %arg7: memref<128x128xf32, #tpu.memory_space<vmem>>, %arg8: memref<1x128xf32, #tpu.memory_space<vmem>>, %arg9: memref<2x128x128xf32, #tpu.memory_space<vmem>>, %arg10: memref<1x128xf32, #tpu.memory_space<vmem>>, %arg11: memref<2x128x128xf32, #tpu.memory_space<vmem>>, %arg12: memref<1x128xf32, #tpu.memory_space<vmem>>, %arg13: memref<1x16x8xf32, #tpu.memory_space<vmem>>) attributes {dimension_semantics = [#tpu.dimension_semantics<parallel>, #tpu.dimension_semantics<parallel>], iteration_bounds = array<i64: 2, 1>, scalar_prefetch = 0 : i64, scratch_operands = 0 : i64, tpu.core_type = #tpu.core_type<tc>, window_params = [{transform_indices = @transform_0, window_bounds = array<i64: 1, 1, 22, 128>}, {pipeline_mode = #tpu.pipeline_mode<synchronous>, transform_indices = @transform_1, window_bounds = array<i64: 2, 128, 128>}, {pipeline_mode = #tpu.pipeline_mode<synchronous>, transform_indices = @transform_2, window_bounds = array<i64: 1, 128>}, {pipeline_mode = #tpu.pipeline_mode<synchronous>, transform_indices = @transform_3, window_bounds = array<i64: 2, 128, 128>}, {pipeline_mode = #tpu.pipeline_mode<synchronous>, transform_indices = @transform_4, window_bounds = array<i64: 1, 128>}, {pipeline_mode = #tpu.pipeline_mode<synchronous>, transform_indices = @transform_5, window_bounds = array<i64: 128, 128>}, {pipeline_mode = #tpu.pipeline_mode<synchronous>, transform_indices = @transform_6, window_bounds = array<i64: 1, 128>}, {pipeline_mode = #tpu.pipeline_mode<synchronous>, transform_indices = @transform_7, window_bounds = array<i64: 2, 128, 128>}, {pipeline_mode = #tpu.pipeline_mode<synchronous>, transform_indices = @transform_8, window_bounds = array<i64: 1, 128>}, {pipeline_mode = #tpu.pipeline_mode<synchronous>, transform_indices = @transform_9, window_bounds = array<i64: 2, 128, 128>}, {pipeline_mode = #tpu.pipeline_mode<synchronous>, transform_indices = @transform_10, window_bounds = array<i64: 1, 128>}, {transform_indices = @transform_11, window_bounds = array<i64: 1, 16, 8>}]} {
    %c0 = arith.constant 0 : index
    %c0_0 = arith.constant 0 : index
    %c0_1 = arith.constant 0 : index
    %c0_2 = arith.constant 0 : index
    %0 = vector.load %arg2[%c0, %c0_0, %c0_1, %c0_2] : memref<1x1x22x128xf32, #tpu.memory_space<vmem>>, vector<1x1x22x128xf32>
    %1 = vector.shape_cast %0 : vector<1x1x22x128xf32> to vector<22x128xf32>
    %2 = vector.extract_strided_slice %1 {offsets = [0, 0], sizes = [21, 128], strides = [1, 1]} : vector<22x128xf32> to vector<21x128xf32>
    %c0_3 = arith.constant 0 : index
    %c0_4 = arith.constant 0 : index
    %c0_5 = arith.constant 0 : index
    %3 = vector.load %arg3[%c0_3, %c0_4, %c0_5] : memref<2x128x128xf32, #tpu.memory_space<vmem>>, vector<1x128x128xf32>
    %4 = vector.shape_cast %3 : vector<1x128x128xf32> to vector<128x128xf32>
    %cst = arith.constant dense<0.000000e+00> : vector<21x128xf32>
    %5 = tpu.matmul %2, %4, %cst {dimension_numbers = #tpu.dot_dimension_numbers<[1], [0], [0], [1], [0, 0, 1, 1], [], []>} : vector<21x128xf32>, vector<128x128xf32>, vector<21x128xf32> -> vector<21x128xf32>
    %6 = vector.extract_strided_slice %1 {offsets = [1, 0], sizes = [21, 128], strides = [1, 1]} : vector<22x128xf32> to vector<21x128xf32>
    %c1 = arith.constant 1 : index
    %c0_6 = arith.constant 0 : index
    %c0_7 = arith.constant 0 : index
    %7 = vector.load %arg3[%c1, %c0_6, %c0_7] : memref<2x128x128xf32, #tpu.memory_space<vmem>>, vector<1x128x128xf32>
    %8 = vector.shape_cast %7 : vector<1x128x128xf32> to vector<128x128xf32>
    %cst_8 = arith.constant dense<0.000000e+00> : vector<21x128xf32>
    %9 = tpu.matmul %6, %8, %cst_8 {dimension_numbers = #tpu.dot_dimension_numbers<[1], [0], [0], [1], [0, 0, 1, 1], [], []>} : vector<21x128xf32>, vector<128x128xf32>, vector<21x128xf32> -> vector<21x128xf32>
    %10 = arith.addf %5, %9 : vector<21x128xf32>
    %c0_9 = arith.constant 0 : index
    %c0_10 = arith.constant 0 : index
    %11 = vector.load %arg4[%c0_9, %c0_10] : memref<1x128xf32, #tpu.memory_space<vmem>>, vector<1x128xf32>
    %12 = vector.broadcast %11 : vector<1x128xf32> to vector<21x128xf32>
    %13 = arith.addf %10, %12 : vector<21x128xf32>
    %cst_11 = arith.constant 0.000000e+00 : f32
    %14 = vector.broadcast %cst_11 : f32 to vector<21x128xf32>
    %15 = arith.maximumf %13, %14 : vector<21x128xf32>
    %16 = tpu.iota {dimensions = array<i32: 0>} : vector<21x1xi32>
    %c16_i32 = arith.constant 16 : i32
    %17 = arith.muli %arg1, %c16_i32 : i32
    %c5_i32 = arith.constant 5 : i32
    %18 = arith.subi %c5_i32, %17 : i32
    %19 = vector.broadcast %18 : i32 to vector<21x1xi32>
    %20 = arith.cmpi sge, %16, %19 : vector<21x1xi32>
    %cst_12 = arith.constant 0.000000e+00 : f32
    %21 = vector.shape_cast %20 : vector<21x1xi1> to vector<21x1xi1>
    %22 = vector.broadcast %21 : vector<21x1xi1> to vector<21x128xi1>
    %23 = vector.broadcast %cst_12 : f32 to vector<21x128xf32>
    %24 = arith.select %22, %15, %23 : vector<21x128xi1>, vector<21x128xf32>
    %25 = vector.extract_strided_slice %24 {offsets = [0, 0], sizes = [20, 128], strides = [1, 1]} : vector<21x128xf32> to vector<20x128xf32>
    %c0_13 = arith.constant 0 : index
    %c0_14 = arith.constant 0 : index
    %c0_15 = arith.constant 0 : index
    %26 = vector.load %arg5[%c0_13, %c0_14, %c0_15] : memref<2x128x128xf32, #tpu.memory_space<vmem>>, vector<1x128x128xf32>
    %27 = vector.shape_cast %26 : vector<1x128x128xf32> to vector<128x128xf32>
    %cst_16 = arith.constant dense<0.000000e+00> : vector<20x128xf32>
    %28 = tpu.matmul %25, %27, %cst_16 {dimension_numbers = #tpu.dot_dimension_numbers<[1], [0], [0], [1], [0, 0, 1, 1], [], []>} : vector<20x128xf32>, vector<128x128xf32>, vector<20x128xf32> -> vector<20x128xf32>
    %29 = vector.extract_strided_slice %24 {offsets = [1, 0], sizes = [20, 128], strides = [1, 1]} : vector<21x128xf32> to vector<20x128xf32>
    %c1_17 = arith.constant 1 : index
    %c0_18 = arith.constant 0 : index
    %c0_19 = arith.constant 0 : index
    %30 = vector.load %arg5[%c1_17, %c0_18, %c0_19] : memref<2x128x128xf32, #tpu.memory_space<vmem>>, vector<1x128x128xf32>
    %31 = vector.shape_cast %30 : vector<1x128x128xf32> to vector<128x128xf32>
    %cst_20 = arith.constant dense<0.000000e+00> : vector<20x128xf32>
    %32 = tpu.matmul %29, %31, %cst_20 {dimension_numbers = #tpu.dot_dimension_numbers<[1], [0], [0], [1], [0, 0, 1, 1], [], []>} : vector<20x128xf32>, vector<128x128xf32>, vector<20x128xf32> -> vector<20x128xf32>
    %33 = arith.addf %28, %32 : vector<20x128xf32>
    %c0_21 = arith.constant 0 : index
    %c0_22 = arith.constant 0 : index
    %34 = vector.load %arg6[%c0_21, %c0_22] : memref<1x128xf32, #tpu.memory_space<vmem>>, vector<1x128xf32>
    %35 = vector.broadcast %34 : vector<1x128xf32> to vector<20x128xf32>
    %36 = arith.addf %33, %35 : vector<20x128xf32>
    %cst_23 = arith.constant 0.000000e+00 : f32
    %37 = vector.broadcast %cst_23 : f32 to vector<20x128xf32>
    %38 = arith.maximumf %36, %37 : vector<20x128xf32>
    %39 = vector.extract_strided_slice %1 {offsets = [2, 0], sizes = [20, 128], strides = [1, 1]} : vector<22x128xf32> to vector<20x128xf32>
    %c0_24 = arith.constant 0 : index
    %c0_25 = arith.constant 0 : index
    %40 = vector.load %arg7[%c0_24, %c0_25] : memref<128x128xf32, #tpu.memory_space<vmem>>, vector<128x128xf32>
    %cst_26 = arith.constant dense<0.000000e+00> : vector<20x128xf32>
    %41 = tpu.matmul %39, %40, %cst_26 {dimension_numbers = #tpu.dot_dimension_numbers<[1], [0], [0], [1], [0, 0, 1, 1], [], []>} : vector<20x128xf32>, vector<128x128xf32>, vector<20x128xf32> -> vector<20x128xf32>
    %c0_27 = arith.constant 0 : index
    %c0_28 = arith.constant 0 : index
    %42 = vector.load %arg8[%c0_27, %c0_28] : memref<1x128xf32, #tpu.memory_space<vmem>>, vector<1x128xf32>
    %43 = vector.broadcast %42 : vector<1x128xf32> to vector<20x128xf32>
    %44 = arith.addf %41, %43 : vector<20x128xf32>
    %45 = arith.addf %38, %44 : vector<20x128xf32>
    %cst_29 = arith.constant 0.000000e+00 : f32
    %46 = vector.broadcast %cst_29 : f32 to vector<20x128xf32>
    %47 = arith.maximumf %45, %46 : vector<20x128xf32>
    %48 = tpu.iota {dimensions = array<i32: 0>} : vector<20x1xi32>
    %c16_i32_30 = arith.constant 16 : i32
    %49 = arith.muli %arg1, %c16_i32_30 : i32
    %c4_i32 = arith.constant 4 : i32
    %50 = arith.subi %c4_i32, %49 : i32
    %51 = vector.broadcast %50 : i32 to vector<20x1xi32>
    %52 = arith.cmpi sge, %48, %51 : vector<20x1xi32>
    %cst_31 = arith.constant 0.000000e+00 : f32
    %53 = vector.shape_cast %52 : vector<20x1xi1> to vector<20x1xi1>
    %54 = vector.broadcast %53 : vector<20x1xi1> to vector<20x128xi1>
    %55 = vector.broadcast %cst_31 : f32 to vector<20x128xf32>
    %56 = arith.select %54, %47, %55 : vector<20x128xi1>, vector<20x128xf32>
    %57 = vector.extract_strided_slice %56 {offsets = [0, 0], sizes = [18, 128], strides = [1, 1]} : vector<20x128xf32> to vector<18x128xf32>
    %c0_32 = arith.constant 0 : index
    %c0_33 = arith.constant 0 : index
    %c0_34 = arith.constant 0 : index
    %58 = vector.load %arg9[%c0_32, %c0_33, %c0_34] : memref<2x128x128xf32, #tpu.memory_space<vmem>>, vector<1x128x128xf32>
    %59 = vector.shape_cast %58 : vector<1x128x128xf32> to vector<128x128xf32>
    %cst_35 = arith.constant dense<0.000000e+00> : vector<18x128xf32>
    %60 = tpu.matmul %57, %59, %cst_35 {dimension_numbers = #tpu.dot_dimension_numbers<[1], [0], [0], [1], [0, 0, 1, 1], [], []>} : vector<18x128xf32>, vector<128x128xf32>, vector<18x128xf32> -> vector<18x128xf32>
    %61 = vector.extract_strided_slice %56 {offsets = [2, 0], sizes = [18, 128], strides = [1, 1]} : vector<20x128xf32> to vector<18x128xf32>
    %c1_36 = arith.constant 1 : index
    %c0_37 = arith.constant 0 : index
    %c0_38 = arith.constant 0 : index
    %62 = vector.load %arg9[%c1_36, %c0_37, %c0_38] : memref<2x128x128xf32, #tpu.memory_space<vmem>>, vector<1x128x128xf32>
    %63 = vector.shape_cast %62 : vector<1x128x128xf32> to vector<128x128xf32>
    %cst_39 = arith.constant dense<0.000000e+00> : vector<18x128xf32>
    %64 = tpu.matmul %61, %63, %cst_39 {dimension_numbers = #tpu.dot_dimension_numbers<[1], [0], [0], [1], [0, 0, 1, 1], [], []>} : vector<18x128xf32>, vector<128x128xf32>, vector<18x128xf32> -> vector<18x128xf32>
    %65 = arith.addf %60, %64 : vector<18x128xf32>
    %c0_40 = arith.constant 0 : index
    %c0_41 = arith.constant 0 : index
    %66 = vector.load %arg10[%c0_40, %c0_41] : memref<1x128xf32, #tpu.memory_space<vmem>>, vector<1x128xf32>
    %67 = vector.broadcast %66 : vector<1x128xf32> to vector<18x128xf32>
    %68 = arith.addf %65, %67 : vector<18x128xf32>
    %cst_42 = arith.constant 0.000000e+00 : f32
    %69 = vector.broadcast %cst_42 : f32 to vector<18x128xf32>
    %70 = arith.maximumf %68, %69 : vector<18x128xf32>
    %71 = tpu.iota {dimensions = array<i32: 0>} : vector<18x1xi32>
    %c16_i32_43 = arith.constant 16 : i32
    %72 = arith.muli %arg1, %c16_i32_43 : i32
    %c2_i32 = arith.constant 2 : i32
    %73 = arith.subi %c2_i32, %72 : i32
    %74 = vector.broadcast %73 : i32 to vector<18x1xi32>
    %75 = arith.cmpi sge, %71, %74 : vector<18x1xi32>
    %cst_44 = arith.constant 0.000000e+00 : f32
    %76 = vector.shape_cast %75 : vector<18x1xi1> to vector<18x1xi1>
    %77 = vector.broadcast %76 : vector<18x1xi1> to vector<18x128xi1>
    %78 = vector.broadcast %cst_44 : f32 to vector<18x128xf32>
    %79 = arith.select %77, %70, %78 : vector<18x128xi1>, vector<18x128xf32>
    %80 = vector.extract_strided_slice %79 {offsets = [0, 0], sizes = [16, 128], strides = [1, 1]} : vector<18x128xf32> to vector<16x128xf32>
    %c0_45 = arith.constant 0 : index
    %c0_46 = arith.constant 0 : index
    %c0_47 = arith.constant 0 : index
    %81 = vector.load %arg11[%c0_45, %c0_46, %c0_47] : memref<2x128x128xf32, #tpu.memory_space<vmem>>, vector<1x128x128xf32>
    %82 = vector.shape_cast %81 : vector<1x128x128xf32> to vector<128x128xf32>
    %cst_48 = arith.constant dense<0.000000e+00> : vector<16x128xf32>
    %83 = tpu.matmul %80, %82, %cst_48 {dimension_numbers = #tpu.dot_dimension_numbers<[1], [0], [0], [1], [0, 0, 1, 1], [], []>} : vector<16x128xf32>, vector<128x128xf32>, vector<16x128xf32> -> vector<16x128xf32>
    %84 = vector.extract_strided_slice %79 {offsets = [2, 0], sizes = [16, 128], strides = [1, 1]} : vector<18x128xf32> to vector<16x128xf32>
    %c1_49 = arith.constant 1 : index
    %c0_50 = arith.constant 0 : index
    %c0_51 = arith.constant 0 : index
    %85 = vector.load %arg11[%c1_49, %c0_50, %c0_51] : memref<2x128x128xf32, #tpu.memory_space<vmem>>, vector<1x128x128xf32>
    %86 = vector.shape_cast %85 : vector<1x128x128xf32> to vector<128x128xf32>
    %cst_52 = arith.constant dense<0.000000e+00> : vector<16x128xf32>
    %87 = tpu.matmul %84, %86, %cst_52 {dimension_numbers = #tpu.dot_dimension_numbers<[1], [0], [0], [1], [0, 0, 1, 1], [], []>} : vector<16x128xf32>, vector<128x128xf32>, vector<16x128xf32> -> vector<16x128xf32>
    %88 = arith.addf %83, %87 : vector<16x128xf32>
    %c0_53 = arith.constant 0 : index
    %c0_54 = arith.constant 0 : index
    %89 = vector.load %arg12[%c0_53, %c0_54] : memref<1x128xf32, #tpu.memory_space<vmem>>, vector<1x128xf32>
    %90 = vector.broadcast %89 : vector<1x128xf32> to vector<16x128xf32>
    %91 = arith.addf %88, %90 : vector<16x128xf32>
    %cst_55 = arith.constant 0.000000e+00 : f32
    %92 = vector.broadcast %cst_55 : f32 to vector<16x128xf32>
    %93 = arith.maximumf %91, %92 : vector<16x128xf32>
    %94 = vector.extract_strided_slice %56 {offsets = [4, 0], sizes = [16, 128], strides = [1, 1]} : vector<20x128xf32> to vector<16x128xf32>
    %95 = arith.addf %93, %94 : vector<16x128xf32>
    %cst_56 = arith.constant 0.000000e+00 : f32
    %96 = vector.broadcast %cst_56 : f32 to vector<16x128xf32>
    %97 = arith.maximumf %95, %96 : vector<16x128xf32>
    %98 = vector.extract_strided_slice %97 {offsets = [0, 0], sizes = [16, 8], strides = [1, 1]} : vector<16x128xf32> to vector<16x8xf32>
    %c0_57 = arith.constant 0 : index
    %c0_58 = arith.constant 0 : index
    %c0_59 = arith.constant 0 : index
    %99 = vector.load %arg13[%c0_57, %c0_58, %c0_59] : memref<1x16x8xf32, #tpu.memory_space<vmem>>, vector<1x16x8xf32>
    %100 = vector.shape_cast %99 : vector<1x16x8xf32> to vector<16x8xf32>
    %101 = vector.shape_cast %98 : vector<16x8xf32> to vector<1x16x8xf32>
    tpu.vector_store %arg13[%c0_57, %c0_58, %c0_59], %101 {strides = array<i32>} : memref<1x16x8xf32, #tpu.memory_space<vmem>>, vector<1x16x8xf32>,
    return
  }
  func.func @transform_0(%arg0: i32, %arg1: i32) -> (i32, i32, i32, i32) {
    %c0_i32 = arith.constant 0 : i32
    %c0_i32_0 = arith.constant 0 : i32
    %c0_i32_1 = arith.constant 0 : i32
    return %arg0, %arg1, %c0_i32, %c0_i32_0 : i32, i32, i32, i32
  }
  func.func @transform_1(%arg0: i32, %arg1: i32) -> (i32, i32, i32) {
    %c0_i32 = arith.constant 0 : i32
    %c0_i32_0 = arith.constant 0 : i32
    %c0_i32_1 = arith.constant 0 : i32
    %c0_i32_2 = arith.constant 0 : i32
    return %c0_i32, %c0_i32_0, %c0_i32_1 : i32, i32, i32
  }
  func.func @transform_2(%arg0: i32, %arg1: i32) -> (i32, i32) {
    %c0_i32 = arith.constant 0 : i32
    %c0_i32_0 = arith.constant 0 : i32
    %c0_i32_1 = arith.constant 0 : i32
    return %c0_i32, %c0_i32_0 : i32, i32
  }
  func.func @transform_3(%arg0: i32, %arg1: i32) -> (i32, i32, i32) {
    %c0_i32 = arith.constant 0 : i32
    %c0_i32_0 = arith.constant 0 : i32
    %c0_i32_1 = arith.constant 0 : i32
    %c0_i32_2 = arith.constant 0 : i32
    return %c0_i32, %c0_i32_0, %c0_i32_1 : i32, i32, i32
  }
  func.func @transform_4(%arg0: i32, %arg1: i32) -> (i32, i32) {
    %c0_i32 = arith.constant 0 : i32
    %c0_i32_0 = arith.constant 0 : i32
    %c0_i32_1 = arith.constant 0 : i32
    return %c0_i32, %c0_i32_0 : i32, i32
  }
  func.func @transform_5(%arg0: i32, %arg1: i32) -> (i32, i32) {
    %c0_i32 = arith.constant 0 : i32
    %c0_i32_0 = arith.constant 0 : i32
    %c0_i32_1 = arith.constant 0 : i32
    return %c0_i32, %c0_i32_0 : i32, i32
  }
  func.func @transform_6(%arg0: i32, %arg1: i32) -> (i32, i32) {
    %c0_i32 = arith.constant 0 : i32
    %c0_i32_0 = arith.constant 0 : i32
    %c0_i32_1 = arith.constant 0 : i32
    return %c0_i32, %c0_i32_0 : i32, i32
  }
  func.func @transform_7(%arg0: i32, %arg1: i32) -> (i32, i32, i32) {
    %c0_i32 = arith.constant 0 : i32
    %c0_i32_0 = arith.constant 0 : i32
    %c0_i32_1 = arith.constant 0 : i32
    %c0_i32_2 = arith.constant 0 : i32
    return %c0_i32, %c0_i32_0, %c0_i32_1 : i32, i32, i32
  }
  func.func @transform_8(%arg0: i32, %arg1: i32) -> (i32, i32) {
    %c0_i32 = arith.constant 0 : i32
    %c0_i32_0 = arith.constant 0 : i32
    %c0_i32_1 = arith.constant 0 : i32
    return %c0_i32, %c0_i32_0 : i32, i32
  }
  func.func @transform_9(%arg0: i32, %arg1: i32) -> (i32, i32, i32) {
    %c0_i32 = arith.constant 0 : i32
    %c0_i32_0 = arith.constant 0 : i32
    %c0_i32_1 = arith.constant 0 : i32
    %c0_i32_2 = arith.constant 0 : i32
    return %c0_i32, %c0_i32_0, %c0_i32_1 : i32, i32, i32
  }
  func.func @transform_10(%arg0: i32, %arg1: i32) -> (i32, i32) {
    %c0_i32 = arith.constant 0 : i32
    %c0_i32_0 = arith.constant 0 : i32
    %c0_i32_1 = arith.constant 0 : i32
    return %c0_i32, %c0_i32_0 : i32, i32
  }
  func.func @transform_11(%arg0: i32, %arg1: i32) -> (i32, i32, i32) {
    %c0_i32 = arith.constant 0 : i32
    %c0_i32_0 = arith.constant 0 : i32
    return %arg0, %arg1, %c0_i32 : i32, i32, i32
  }
}

</mosaic_0001>

<bundles_post_ra>
// kernel: temporal_conv_net.1
= control target key start
LH: loop header
LB: loop body
LE: loop exit
PB: predicated region body
PF: predicated region fallthrough
CT: control target
= control target key end

     0   :  { %s2511_s17 = smov 0   ;;  %s2513_s18 = smov 0   ;;  %s3139_s0 = inlined_call_operand.vmem [shape: f32[2,1,22,128], index: 0, kind: input, shape index: {}]   ;;  %s3140_s1 = inlined_call_operand.vmem [shape: f32[2,128,128], index: 1, kind: input, shape index: {}]   ;;  %s3141_s2 = inlined_call_operand.vmem [shape: f32[1,128], index: 2, kind: input, shape index: {}]   ;;  %s3142_s3 = inlined_call_operand.vmem [shape: f32[2,128,128], index: 3, kind: input, shape index: {}]   ;;  %s3143_s4 = inlined_call_operand.vmem [shape: f32[1,128], index: 4, kind: input, shape index: {}]   ;;  %s3144_s5 = inlined_call_operand.vmem [shape: f32[128,128], index: 5, kind: input, shape index: {}]   ;;  %s3145_s6 = inlined_call_operand.vmem [shape: f32[1,128], index: 6, kind: input, shape index: {}]   ;;  %s3146_s7 = inlined_call_operand.vmem [shape: f32[2,128,128], index: 7, kind: input, shape index: {}]   ;;  %s3147_s8 = inlined_call_operand.vmem [shape: f32[1,128], index: 8, kind: input, shape index: {}]   ;;  %s3148_s9 = inlined_call_operand.vmem [shape: f32[2,128,128], index: 9, kind: input, shape index: {}]   ;;  %s3149_s10 = inlined_call_operand.vmem [shape: f32[1,128], index: 10, kind: input, shape index: {}]   ;;  %s3150_s11 = inlined_call_operand.vmem [shape: f32[2,16,8], index: 11, kind: output, shape index: {}]  }
   0x1   :  { %s2515_s19 = smov 0  }
   0x2 LB: > { %s33_s20 = sadd.s32 1, %s2442_s18  ;;  %p1557_p0 = scmp.ge.s32.totalorder %s2446_s19, 1  ;;  %s2446_s19 = sphi %s2515_s19, %s21_s19   ;;  %s2442_s18 = sphi %s2513_s18, %s3152_s18   ;;  %s2438_s17 = sphi %s2511_s17, %s3151_s17  }
   0x3   : > { %p35_p1 = scmp.ge.s32.totalorder %s33_s20, 2  ;;  %p357_p2 = scmp.lt.s32.totalorder %s2446_s19, 3 }
   0x5   : > { %s3154_s20 = smov (%p35_p1, %s33_s20), 0  ;;  %p358_p3 = pnand %p1557_p0, %p357_p2 }
   0x6   : > { %v1561_v0 = vld [vmem:[%s3140_s1 + $0x80] sm:$0xff] (!%p358_p3)  ;;  %v1562_v1 = vld [vmem:[%s3140_s1 + $0x88] sm:$0xff] (!%p358_p3)  ;;  %v2448_v3 = vmov (!%p358_p3), 0.0|0.0   ;;  %v1563_v6 = vld [vmem:[%s3140_s1 + $0x90] sm:$0xff] (!%p358_p3)  ;;  %vm2449_vm0 = vmmov (!%p358_p3), 0   ;;  %v2450_v11 = vmov (!%p358_p3), 0.0  }
   0x7   : > { %361 = sbr.rel (%p358_p3) target bundleno = 1006 (0x3ee), region = 64  ;;  %v427_v2 = vld [vmem:[%s3140_s1] sm:$0xff] (!%p358_p3)  ;;  %2162 = vmatprep.subr.bf16.mxu0 (!%p358_p3), %v2448_v3  ;;  %2186 = vmatprep.subr.bf16.mxu1 (!%p358_p3), %v2448_v3  ;;  %v2163_v4 = vpack.c.bf16 (!%p358_p3), %v1562_v1, %v1561_v0  ;;  %v428_v5 = vld [vmem:[%s3140_s1 + $0x8] sm:$0xff] (!%p358_p3)  ;;  %v1564_v7 = vld [vmem:[%s3140_s1 + $0x98] sm:$0xff] (!%p358_p3)  ;;  %p405_p4 = scmp.lt.s32.totalorder (!%p358_p3), %s2438_s17, 1  ;;  %vm463_vm1 = vcmask (!%p358_p3), 1046528  }
   0x8   : > { %v2187_v8 = vpack.c.bf16 (!%p358_p3), %v428_v5, %v427_v2  ;;  %v429_v9 = vld [vmem:[%s3140_s1 + $0x10] sm:$0xff] (!%p358_p3)  ;;  %v430_v10 = vld [vmem:[%s3140_s1 + $0x18] sm:$0xff] (!%p358_p3)  ;;  %1837 = vmatprep.mubr.msk.f32.mxu0 (!%p358_p3), %vm2449_vm0, %v2450_v11  ;;  %1878 = vmatprep.mubr.msk.f32.mxu1 (!%p358_p3), %vm2449_vm0, %v2450_v11  ;;  %v2166_v12 = vpack.c.bf16 (!%p358_p3), %v1564_v7, %v1563_v6  ;;  %v1565_v14 = vld [vmem:[%s3140_s1 + $0xa0] sm:$0xff] (!%p358_p3)  ;;  %vm904_vm3 = vcmask (!%p358_p3), 1045504   ;;  %vm1448_vm5 = vcmask (!%p358_p3), 1043456  }
   0x9   : > { %2164 = vmatpush3.bf16.msra.mxu0 (!%p358_p3), %v2163_v4  ;;  %v2190_v13 = vpack.c.bf16 (!%p358_p3), %v430_v10, %v429_v9  ;;  %v1566_v15 = vld [vmem:[%s3140_s1 + $0xa8] sm:$0xff] (!%p358_p3)  ;;  %v431_v16 = vld [vmem:[%s3140_s1 + $0x20] sm:$0xff] (!%p358_p3)  ;;  %v1567_v20 = vld [vmem:[%s3140_s1 + $0xb0] sm:$0xff] (!%p358_p3)  ;;  %vm1460_vm7 = vcmask (!%p358_p3), 64512  }
   0xa   : > { %2188 = vmatpush3.bf16.msra.mxu1 (!%p358_p3), %v2187_v8  ;;  %2165 = vmatprep.subr.bf16.mxu0 (!%p358_p3), %v2448_v3  ;;  %v432_v17 = vld [vmem:[%s3140_s1 + $0x28] sm:$0xff] (!%p358_p3)  ;;  %v2169_v18 = vpack.c.bf16 (!%p358_p3), %v1566_v15, %v1565_v14  ;;  %v1568_v21 = vld [vmem:[%s3140_s1 + $0xb8] sm:$0xff] (!%p358_p3)  ;;  %v433_v22 = vld [vmem:[%s3140_s1 + $0x30] sm:$0xff] (!%p358_p3) }
   0xb   : > { %2189 = vmatprep.subr.bf16.mxu1 (!%p358_p3), %v2448_v3  ;;  %v2193_v19 = vpack.c.bf16 (!%p358_p3), %v432_v17, %v431_v16  ;;  %v434_v23 = vld [vmem:[%s3140_s1 + $0x38] sm:$0xff] (!%p358_p3)  ;;  %v2172_v24 = vpack.c.bf16 (!%p358_p3), %v1568_v21, %v1567_v20  ;;  %v1569_v26 = vld [vmem:[%s3140_s1 + $0xc0] sm:$0xff] (!%p358_p3)  ;;  %v1570_v27 = vld [vmem:[%s3140_s1 + $0xc8] sm:$0xff] (!%p358_p3) }
   0xc   : > { %v2196_v25 = vpack.c.bf16 (!%p358_p3), %v434_v23, %v433_v22  ;;  %v435_v28 = vld [vmem:[%s3140_s1 + $0x40] sm:$0xff] (!%p358_p3)  ;;  %v436_v29 = vld [vmem:[%s3140_s1 + $0x48] sm:$0xff] (!%p358_p3)  ;;  %v2175_v30 = vpack.c.bf16 (!%p358_p3), %v1570_v27, %v1569_v26  ;;  %v1571_v32 = vld [vmem:[%s3140_s1 + $0xd0] sm:$0xff] (!%p358_p3) }
   0xd   : > { %2167 = vmatpush3.bf16.msra.mxu0 (!%p358_p3), %v2166_v12  ;;  %v2199_v31 = vpack.c.bf16 (!%p358_p3), %v436_v29, %v435_v28  ;;  %v1572_v33 = vld [vmem:[%s3140_s1 + $0xd8] sm:$0xff] (!%p358_p3)  ;;  %v437_v34 = vld [vmem:[%s3140_s1 + $0x50] sm:$0xff] (!%p358_p3)  ;;  %v1573_v38 = vld [vmem:[%s3140_s1 + $0xe0] sm:$0xff] (!%p358_p3) }
   0xe   : > { %2191 = vmatpush3.bf16.msra.mxu1 %v2190_v13  ;;  %2168 = vmatprep.subr.bf16.mxu0 %v2448_v3  ;;  %s3156_s17 = smov (!%p405_p4, %s2438_s17), 1  ;;  %v438_v35 = vld [vmem:[%s3140_s1 + $0x58] sm:$0xff]  ;;  %v2178_v36 = vpack.c.bf16 %v1572_v33, %v1571_v32  ;;  %v1574_v39 = vld [vmem:[%s3140_s1 + $0xe8] sm:$0xff]  ;;  %v439_v40 = vld [vmem:[%s3140_s1 + $0x60] sm:$0xff] }
   0xf   : > { %2192 = vmatprep.subr.bf16.mxu1 %v2448_v3  ;;  %s2396_s24 = smul.u32 24, %s3156_s17  ;;  %v2202_v37 = vpack.c.bf16 %v438_v35, %v437_v34  ;;  %v440_v41 = vld [vmem:[%s3140_s1 + $0x68] sm:$0xff]  ;;  %v2181_v42 = vpack.c.bf16 %v1574_v39, %v1573_v38  ;;  %v1575_v43 = vld [vmem:[%s3140_s1 + $0xf0] sm:$0xff]  ;;  %v1576_v45 = vld [vmem:[%s3140_s1 + $0xf8] sm:$0xff]  ;;  %s1635_s23 = sshll.u32 %s3156_s17, 4 }
  0x10   : > { %v2205_v44 = vpack.c.bf16 %v440_v41, %v439_v40  ;;  %v441_v48 = vld [vmem:[%s3140_s1 + $0x70] sm:$0xff]  ;;  %v442_v49 = vld [vmem:[%s3140_s1 + $0x78] sm:$0xff]  ;;  %v2184_v50 = vpack.c.bf16 %v1576_v45, %v1575_v43  ;;  %v664_v55 = vld [vmem:[%s3142_s3] sm:$0xff]  ;;  %s422_s26 = scalar_lea.vmem %s3150_s11, %s1635_s23 }
  0x11   : > { %2170 = vmatpush3.bf16.msra.mxu0 %v2169_v18  ;;  %s413_s16 = scalar_lea.vmem %s3139_s0, %s2396_s24  ;;  %v2208_v53 = vpack.c.bf16 %v442_v49, %v441_v48  ;;  %v665_v56 = vld [vmem:[%s3142_s3 + $0x8] sm:$0xff]  ;;  %v1578_v57 = vld [vmem:[%s3142_s3 + $0x80] sm:$0xff]  ;;  %v666_v62 = vld [vmem:[%s3142_s3 + $0x10] sm:$0xff] }
  0x12   : > { %2194 = vmatpush3.bf16.msra.mxu1 %v2193_v19  ;;  %2171 = vmatprep.subr.bf16.mxu0 %v2448_v3  ;;  %v2646_v46 = vld [vmem:[%s413_s16] sm:$0xff]  ;;  %v2648_v47 = vld [vmem:[%s413_s16 + $0x8] sm:$0xff]  ;;  %v2660_v54 = vld [vmem:[%s413_s16 + $0x10] sm:$0x3f]  ;;  %v2235_v61 = vpack.c.bf16 %v665_v56, %v664_v55 }
  0x13   : > { %2195 = vmatprep.subr.bf16.mxu1 %v2448_v3  ;;  %v464_v51 = vrot.slane %v2646_v46, 1  ;;  %v465_v52 = vrot.slane %v2648_v47, 1  ;;  %v1579_v58 = vld [vmem:[%s3142_s3 + $0x88] sm:$0xff]  ;;  %v467_v60 = vrot.slane %v2660_v54, 1  ;;  %v667_v63 = vld [vmem:[%s3142_s3 + $0x18] sm:$0xff]  ;;  %v1580_v1 = vld [vmem:[%s3142_s3 + $0x90] sm:$0xff] }
  0x14   : > { %v2211_v0 = vpack.c.bf16 %v1579_v58, %v1578_v57  ;;  %v1581_v2 = vld [vmem:[%s3142_s3 + $0x98] sm:$0xff]  ;;  %v2238_v5 = vpack.c.bf16 %v667_v63, %v666_v62  ;;  %v668_v6 = vld [vmem:[%s3142_s3 + $0x20] sm:$0xff]  ;;  %v669_v7 = vld [vmem:[%s3142_s3 + $0x28] sm:$0xff] }
  0x15   : > { %2173 = vmatpush3.bf16.msra.mxu0 %v2172_v24  ;;  %v466_v59 = vsel %vm463_vm1, %v464_v51, %v465_v52  ;;  %v468_v4 = vsel %vm463_vm1, %v465_v52, %v467_v60  ;;  %v2214_v8 = vpack.c.bf16 %v1581_v2, %v1580_v1  ;;  %v1582_v9 = vld [vmem:[%s3142_s3 + $0xa0] sm:$0xff]  ;;  %v1583_v10 = vld [vmem:[%s3142_s3 + $0xa8] sm:$0xff]  ;;  %v2241_v12 = vpack.c.bf16 %v669_v7, %v668_v6  ;;  %v670_v13 = vld [vmem:[%s3142_s3 + $0x30] sm:$0xff] }
  0x16   : > { %2197 = vmatpush3.bf16.msra.mxu1 %v2196_v25  ;;  %2174 = vmatprep.subr.bf16.mxu0 %v2448_v3  ;;  %v671_v14 = vld [vmem:[%s3142_s3 + $0x38] sm:$0xff]  ;;  %v2217_v15 = vpack.c.bf16 %v1583_v10, %v1582_v9  ;;  %v1584_v16 = vld [vmem:[%s3142_s3 + $0xb0] sm:$0xff]  ;;  %v672_v19 = vld [vmem:[%s3142_s3 + $0x40] sm:$0xff] }
  0x17   : > { %2198 = vmatprep.subr.bf16.mxu1 %v2448_v3  ;;  %v1585_v17 = vld [vmem:[%s3142_s3 + $0xb8] sm:$0xff]  ;;  %v2244_v18 = vpack.c.bf16 %v671_v14, %v670_v13  ;;  %v673_v20 = vld [vmem:[%s3142_s3 + $0x48] sm:$0xff]  ;;  %v1586_v22 = vld [vmem:[%s3142_s3 + $0xc0] sm:$0xff] }
  0x18   : > { %v2220_v21 = vpack.c.bf16 %v1585_v17, %v1584_v16  ;;  %v1587_v23 = vld [vmem:[%s3142_s3 + $0xc8] sm:$0xff]  ;;  %v2247_v24 = vpack.c.bf16 %v673_v20, %v672_v19  ;;  %v674_v25 = vld [vmem:[%s3142_s3 + $0x50] sm:$0xff]  ;;  %v675_v26 = vld [vmem:[%s3142_s3 + $0x58] sm:$0xff] }
  0x19   : > { %2176 = vmatpush3.bf16.msra.mxu0 %v2175_v30  ;;  %v2223_v27 = vpack.c.bf16 %v1587_v23, %v1586_v22  ;;  %v2250_v28 = vpack.c.bf16 %v675_v26, %v674_v25  ;;  %v676_v29 = vld [vmem:[%s3142_s3 + $0x60] sm:$0xff]  ;;  %v677_v30 = vld [vmem:[%s3142_s3 + $0x68] sm:$0xff]  ;;  %v1588_v32 = vld [vmem:[%s3142_s3 + $0xd0] sm:$0xff] }
  0x1a   : > { %2200 = vmatpush3.bf16.msra.mxu1 %v2199_v31  ;;  %2177 = vmatprep.subr.bf16.mxu0 %v2448_v3  ;;  %v2253_v31 = vpack.c.bf16 %v677_v30, %v676_v29  ;;  %v1589_v33 = vld [vmem:[%s3142_s3 + $0xd8] sm:$0xff]  ;;  %v678_v35 = vld [vmem:[%s3142_s3 + $0x70] sm:$0xff]  ;;  %v1590_v38 = vld [vmem:[%s3142_s3 + $0xe0] sm:$0xff] }
  0x1b   : > { %2201 = vmatprep.subr.bf16.mxu1 %v2448_v3  ;;  %v2226_v34 = vpack.c.bf16 %v1589_v33, %v1588_v32  ;;  %v1591_v39 = vld [vmem:[%s3142_s3 + $0xe8] sm:$0xff]  ;;  %v1592_v41 = vld [vmem:[%s3142_s3 + $0xf0] sm:$0xff]  ;;  %v1577_v49 = vld [vmem:[%s3141_s2] ss:$0 sm:$0xff] }
  0x1c   : > { %v2229_v40 = vpack.c.bf16 %v1591_v39, %v1590_v38  ;;  %v881_v2 = vld [vmem:[%s3144_s5] sm:$0xff]  ;;  %v883_v14 = vld [vmem:[%s3144_s5 + $0x10] sm:$0xff]  ;;  %v888_v25 = vld [vmem:[%s3144_s5 + $0x38] sm:$0xff]  ;;  %v905_v39 = vrot.slane %v2646_v46, 2 }
  0x1d   : > { %2179 = vmatpush3.bf16.msra.mxu0 %v2178_v36  ;;  %v679_v36 = vld [vmem:[%s3142_s3 + $0x78] sm:$0xff]  ;;  %v885_v20 = vld [vmem:[%s3144_s5 + $0x20] sm:$0xff]  ;;  %v891_v30 = vld [vmem:[%s3144_s5 + $0x50] sm:$0xff] }
  0x1e   : > { %2203 = vmatpush3.bf16.msra.mxu1 %v2202_v37  ;;  %2180 = vmatprep.subr.bf16.mxu0 %v2448_v3  ;;  %v2256_v37 = vpack.c.bf16 %v679_v36, %v678_v35  ;;  %v893_v33 = vld [vmem:[%s3144_s5 + $0x60] sm:$0xff]  ;;  %v895_v36 = vld [vmem:[%s3144_s5 + $0x70] sm:$0xff] }
  0x1f   : > { %2204 = vmatprep.subr.bf16.mxu1 %v2448_v3 }
  0x21   : > { %2182 = vmatpush3.bf16.msra.mxu0 %v2181_v42  ;;  %v1593_v42 = vld [vmem:[%s3142_s3 + $0xf8] sm:$0xff] }
  0x22   : > { %2206 = vmatpush3.bf16.msra.mxu1 %v2205_v44  ;;  %2183 = vmatprep.subr.bf16.mxu0 %v2448_v3  ;;  %v2232_v43 = vpack.c.bf16 %v1593_v42, %v1592_v41  ;;  %v645_v44 = vlaneseq  ;;  %v908_v42 = vrot.slane %v2660_v54, 2 }
  0x23   : > { %2207 = vmatprep.subr.bf16.mxu1 %v2448_v3 }
  0x25   : > { %2185 = vmatpush3.bf16.msra.mxu0 %v2184_v50  ;;  %v2798_v50 = vshrl.u32 %v645_v44, 7  ;;  %v1015_v44 = vld [vmem:[%s3146_s7 + $0x10] sm:$0xff] }
  0x26   : > { %2209 = vmatpush3.bf16.msra.mxu1 %v2208_v53  ;;  %2210 = vmatprep.subr.bf16.mxu0 %v2448_v3 }
  0x27   : > { %2234 = vmatprep.subr.bf16.mxu1 %v2448_v3  ;;  %vm652_vm2 = vcmp.ge.s32.totalorder %v2798_v50, 5  ;;  %vm1001_vm4 = vcmp.ge.s32.totalorder %v2798_v50, 4  ;;  %vm1232_vm6 = vcmp.ge.s32.totalorder %v2798_v50, 2  ;;  %v1253_v50 = vld [vmem:[%s3148_s9 + $0x48] sm:$0xff] }
  0x28   : > { %1838 = vmatmul.mubr.f32.vlgmr.msra.gmra.mrb[0].mxu0 %v466_v59 }
  0x29   : > { %1879 = vmatmul.mubr.f32.vlgmr.msra.gmra.mrb[0].mxu1 %v2646_v46  ;;  %1840 = vmatprep.mubr.msk.f32.mxu0 %vm2449_vm0, %v2450_v11  ;;  %v1013_v46 = vld [vmem:[%s3146_s7] sm:$0xff] }
  0x2a   : > { %1881 = vmatprep.mubr.msk.f32.mxu1 %vm2449_vm0, %v2450_v11  ;;  %2236 = vmatpush3.bf16.msra.mxu1 %v2235_v61 }
  0x2b   : > { %2237 = vmatprep.subr.bf16.mxu1 %v2448_v3  ;;  %2212 = vmatpush3.bf16.msra.mxu0 %v2211_v0 }
  0x2c   : > { %1841 = vmatmul.mubr.f32.gmra.mrb[2].mxu0 %v468_v4  ;;  %2213 = vmatprep.subr.bf16.mxu0 %v2448_v3  ;;  %v882_v4 = vld [vmem:[%s3144_s5 + $0x8] sm:$0xff] }
  0x2d   : > { %1882 = vmatmul.mubr.f32.gmra.mrb[2].mxu1 %v2648_v47  ;;  %1843 = vmatprep.mubr.msk.f32.mxu0 %vm2449_vm0, %v2450_v11  ;;  %v2259_v13 = vpack.c.bf16 %v882_v4, %v881_v2  ;;  %v1021_v2 = vld [vmem:[%s3146_s7 + $0x40] sm:$0xff]  ;;  %v1022_v4 = vld [vmem:[%s3146_s7 + $0x48] sm:$0xff] }
  0x2e   : > { %1884 = vmatprep.mubr.msk.f32.mxu1 %vm2449_vm0, %v2450_v11  ;;  %2239 = vmatpush3.bf16.msra.mxu1 %v2238_v5 }
  0x2f   : > { %2240 = vmatprep.subr.bf16.mxu1 %v2448_v3  ;;  %2215 = vmatpush3.bf16.msra.mxu0 %v2214_v8 }
  0x30   : > { %1844 = vmatmul.mubr.f32.gmra.mrb[4].mxu0 %v467_v60  ;;  %2216 = vmatprep.subr.bf16.mxu0 %v2448_v3 }
  0x31   : > { %1885 = vmatmul.mubr.f32.gmra.mrb[4].mxu1 %v2660_v54  ;;  %1919 = vmatprep.mubr.msk.f32.mxu0 %vm2449_vm0, %v2450_v11 }
  0x32   : > { %2242 = vmatpush3.bf16.msra.mxu1 %v2241_v12  ;;  %1960 = vmatprep.mubr.msk.f32.mxu1 %vm2449_vm0, %v2450_v11 }
  0x33   : > { %2243 = vmatprep.subr.bf16.mxu1 %v2448_v3  ;;  %2218 = vmatpush3.bf16.msra.mxu0 %v2217_v15  ;;  %v884_v15 = vld [vmem:[%s3144_s5 + $0x18] sm:$0xff] }
  0x34   : > { %2219 = vmatprep.subr.bf16.mxu0 %v2448_v3  ;;  %v2262_v19 = vpack.c.bf16 %v884_v15, %v883_v14 }
  0x36   : > { %2245 = vmatpush3.bf16.msra.mxu1 %v2244_v18 }
  0x37   : > { %2246 = vmatprep.subr.bf16.mxu1 %v2448_v3  ;;  %2221 = vmatpush3.bf16.msra.mxu0 %v2220_v21  ;;  %v886_v21 = vld [vmem:[%s3144_s5 + $0x28] sm:$0xff] }
  0x38   : > { %2222 = vmatprep.subr.bf16.mxu0 %v2448_v3  ;;  %v2265_v23 = vpack.c.bf16 %v886_v21, %v885_v20  ;;  %v1608_v20 = vld [vmem:[%s3146_s7 + $0xd8] sm:$0xff] }
  0x3a   : > { %2248 = vmatpush3.bf16.msra.mxu1 %v2247_v24  ;;  %v887_v24 = vld [vmem:[%s3144_s5 + $0x30] sm:$0xff] }
  0x3b   : > { %2249 = vmatprep.subr.bf16.mxu1 %v2448_v3  ;;  %2224 = vmatpush3.bf16.msra.mxu0 %v2223_v27  ;;  %v2268_v26 = vpack.c.bf16 %v888_v25, %v887_v24  ;;  %v889_v27 = vld [vmem:[%s3144_s5 + $0x40] sm:$0xff] }
  0x3c   : > { %2225 = vmatprep.subr.bf16.mxu0 %v2448_v3  ;;  %v1609_v25 = vld [vmem:[%s3146_s7 + $0xe0] sm:$0xff] }
  0x3e   : > { %2251 = vmatpush3.bf16.msra.mxu1 %v2250_v28  ;;  %v890_v28 = vld [vmem:[%s3144_s5 + $0x48] sm:$0xff] }
  0x3f   : > { %2252 = vmatprep.subr.bf16.mxu1 %v2448_v3  ;;  %2227 = vmatpush3.bf16.msra.mxu0 %v2226_v34  ;;  %v2271_v29 = vpack.c.bf16 %v890_v28, %v889_v27  ;;  %v894_v34 = vld [vmem:[%s3144_s5 + $0x68] sm:$0xff]  ;;  %v1611_v28 = vld [vmem:[%s3146_s7 + $0xf0] sm:$0xff] }
  0x40   : > { %2228 = vmatprep.subr.bf16.mxu0 %v2448_v3  ;;  %v2277_v35 = vpack.c.bf16 %v894_v34, %v893_v33 }
  0x42   : > { %2254 = vmatpush3.bf16.msra.mxu1 %v2253_v31  ;;  %v892_v31 = vld [vmem:[%s3144_s5 + $0x58] sm:$0xff] }
  0x43   : > { %2255 = vmatprep.subr.bf16.mxu1 %v2448_v3  ;;  %2230 = vmatpush3.bf16.msra.mxu0 %v2229_v40  ;;  %v2274_v32 = vpack.c.bf16 %v892_v31, %v891_v30  ;;  %v906_v40 = vrot.slane %v2648_v47, 2  ;;  %v1014_v47 = vld [vmem:[%s3146_s7 + $0x8] sm:$0xff]  ;;  %v1615_v31 = vld [vmem:[%s3148_s9 + $0x80] sm:$0xff] }
  0x44   : > { %2231 = vmatprep.subr.bf16.mxu0 %v2448_v3  ;;  %v2307_v54 = vpack.c.bf16 %v1014_v47, %v1013_v46 }
  0x45   : > { %v907_v41 = vsel %vm904_vm3, %v905_v39, %v906_v40 }
  0x46   : > { %2257 = vmatpush3.bf16.msra.mxu1 %v2256_v37  ;;  %v896_v37 = vld [vmem:[%s3144_s5 + $0x78] sm:$0xff] }
  0x47   : > { %2282 = vmatprep.subr.bf16.mxu1 %v2448_v3  ;;  %2233 = vmatpush3.bf16.msra.mxu0 %v2232_v43  ;;  %v2280_v38 = vpack.c.bf16 %v896_v37, %v895_v36  ;;  %v909_v43 = vsel %vm904_vm3, %v906_v40, %v908_v42 }
  0x48   : > { %2258 = vmatprep.subr.bf16.mxu0 %v2448_v3 }
  0xfb   : > { %v538_v45 = vpop.f32.mrb[0].mxu0 }
  0xfc   : > { %v618_v48 = vpop.f32.mrb[0].mxu1  ;;  %v1839_v51 = vpop.f32.mrb[1].mxu0 }
  0xfd   : > { %v619_v52 = vadd.f32 %v618_v48, %v538_v45  ;;  %v1880_v53 = vpop.f32.mrb[1].mxu1  ;;  %v1016_v45 = vld [vmem:[%s3146_s7 + $0x18] sm:$0xff]  ;;  %v1597_v48 = vld [vmem:[%s3146_s7 + $0x80] sm:$0xff]  ;;  %v1598_v51 = vld [vmem:[%s3146_s7 + $0x88] sm:$0xff] }
  0xfe   : > { %v1018_v53 = vld [vmem:[%s3146_s7 + $0x28] sm:$0xff] }
  0xff   : > { %v639_v55 = vadd.f32 %v1577_v49, %v619_v52  ;;  %v543_v56 = vpop.f32.mrb[2].mxu0  ;;  %v1017_v52 = vld [vmem:[%s3146_s7 + $0x20] sm:$0xff] }
 0x100   : > { %v623_v57 = vpop.f32.mrb[2].mxu1  ;;  %v1842_v58 = vpop.f32.mrb[3].mxu0 }
 0x101   : > { %v642_v59 = vmax.f32 %v639_v55, 0.0  ;;  %v624_v60 = vadd.f32 %v623_v57, %v543_v56  ;;  %v1883_v61 = vpop.f32.mrb[3].mxu1  ;;  %v2283_v55 = vpack.c.bf16 %v1598_v51, %v1597_v48  ;;  %v1599_v56 = vld [vmem:[%s3146_s7 + $0x90] sm:$0xff]  ;;  %v1600_v57 = vld [vmem:[%s3146_s7 + $0x98] sm:$0xff]  ;;  %v2313_v58 = vpack.c.bf16 %v1018_v53, %v1017_v52 }
 0x102   : > { %v1020_v61 = vld [vmem:[%s3146_s7 + $0x38] sm:$0xff] }
 0x103   : > { %v640_v62 = vadd.f32 %v1577_v49, %v624_v60  ;;  %1961 = vmatmul.mubr.msk.f32.vlgmr.msra.gmra.mrb[6].mxu1 %vm652_vm2, %v642_v59  ;;  %v548_v63 = vpop.f32.mrb[4].mxu0  ;;  %v661_v0 = vsel %vm652_vm2, %v642_v59, 0.0  ;;  %v2286_v59 = vpack.c.bf16 %v1600_v57, %v1599_v56  ;;  %v1019_v60 = vld [vmem:[%s3146_s7 + $0x30] sm:$0xff] }
 0x104   : > { %v628_v1 = vpop.f32.mrb[4].mxu1  ;;  %1963 = vmatprep.mubr.msk.f32.mxu1 %vm2449_vm0, %v2450_v11  ;;  %v1845_v5 = vpop.f32.mrb[5].mxu0  ;;  %v700_v9 = vrot.slane %v661_v0, 1  ;;  %2284 = vmatpush3.bf16.msra.mxu1 %v2283_v55  ;;  %v2316_v0 = vpack.c.bf16 %v1020_v61, %v1019_v60 }
 0x105   : > { %v643_v6 = vmax.f32 %v640_v62, 0.0  ;;  %v629_v7 = vadd.f32 %v628_v1, %v548_v63  ;;  %v1886_v8 = vpop.f32.mrb[5].mxu1  ;;  %2285 = vmatprep.subr.bf16.mxu1 %v2448_v3  ;;  %v1601_v62 = vld [vmem:[%s3146_s7 + $0xa0] sm:$0xff]  ;;  %v1602_v63 = vld [vmem:[%s3146_s7 + $0xa8] sm:$0xff]  ;;  %v1603_v5 = vld [vmem:[%s3146_s7 + $0xb0] sm:$0xff] }
 0x106   : > { %v2289_v1 = vpack.c.bf16 %v1602_v63, %v1601_v62 }
 0x107   : > { %v701_v10 = vrot.slane %v643_v6, 1  ;;  %v641_v12 = vadd.f32 %v1577_v49, %v629_v7  ;;  %1964 = vmatmul.mubr.f32.gmra.mrb[8].mxu1 %v643_v6  ;;  %v2310_v49 = vpack.c.bf16 %v1016_v45, %v1015_v44  ;;  %v1604_v6 = vld [vmem:[%s3146_s7 + $0xb8] sm:$0xff]  ;;  %v2319_v7 = vpack.c.bf16 %v1022_v4, %v1021_v2  ;;  %v1595_v45 = vld [vmem:[%s3143_s4] ss:$0 sm:$0xff] }
 0x108   : > { %1966 = vmatprep.mubr.msk.f32.mxu1 %vm2449_vm0, %v2450_v11  ;;  %2287 = vmatpush3.bf16.msra.mxu1 %v2286_v59  ;;  %v2292_v8 = vpack.c.bf16 %v1604_v6, %v1603_v5 }
 0x109   : > { %v644_v16 = vmax.f32 %v641_v12, 0.0  ;;  %v702_v17 = vsel %vm463_vm1, %v700_v9, %v701_v10  ;;  %2288 = vmatprep.subr.bf16.mxu1 %v2448_v3  ;;  %v1023_v9 = vld [vmem:[%s3146_s7 + $0x50] sm:$0xff]  ;;  %v1605_v12 = vld [vmem:[%s3146_s7 + $0xc0] sm:$0xff] }
 0x10a   : > { %1920 = vmatmul.mubr.f32.vlgmr.msra.gmra.mrb[6].mxu0 %v702_v17  ;;  %v1026_v17 = vld [vmem:[%s3146_s7 + $0x68] sm:$0xff] }
 0x10b   : > { %v703_v18 = vrot.slane %v644_v16, 1  ;;  %2260 = vmatpush3.bf16.msra.mxu0 %v2259_v13  ;;  %1922 = vmatprep.mubr.msk.f32.mxu0 %vm2449_vm0, %v2450_v11  ;;  %v1606_v13 = vld [vmem:[%s3146_s7 + $0xc8] sm:$0xff] }
 0x10c   : > { %2261 = vmatprep.subr.bf16.mxu0 %v2448_v3  ;;  %1967 = vmatmul.mubr.f32.gmra.mrb[10].mxu1 %v644_v16  ;;  %v2295_v15 = vpack.c.bf16 %v1606_v13, %v1605_v12  ;;  %v1025_v16 = vld [vmem:[%s3146_s7 + $0x60] sm:$0xff] }
 0x10d   : > { %v704_v22 = vsel %vm463_vm1, %v701_v10, %v703_v18  ;;  %2042 = vmatprep.mubr.msk.f32.mxu1 %vm2449_vm0, %v2450_v11  ;;  %2290 = vmatpush3.bf16.msra.mxu1 %v2289_v1  ;;  %v1024_v10 = vld [vmem:[%s3146_s7 + $0x58] sm:$0xff] }
 0x10e   : > { %1923 = vmatmul.mubr.f32.gmra.mrb[8].mxu0 %v704_v22  ;;  %2291 = vmatprep.subr.bf16.mxu1 %v2448_v3  ;;  %v2322_v14 = vpack.c.bf16 %v1024_v10, %v1023_v9  ;;  %v1027_v22 = vld [vmem:[%s3146_s7 + $0x70] sm:$0xff]  ;;  %v1618_v10 = vld [vmem:[%s3148_s9 + $0x98] sm:$0xff] }
 0x10f   : > { %2263 = vmatpush3.bf16.msra.mxu0 %v2262_v19  ;;  %1925 = vmatprep.mubr.msk.f32.mxu0 %vm2449_vm0, %v2450_v11  ;;  %v1607_v19 = vld [vmem:[%s3146_s7 + $0xd0] sm:$0xff] }
 0x110   : > { %2264 = vmatprep.subr.bf16.mxu0 %v2448_v3  ;;  %v2298_v21 = vpack.c.bf16 %v1608_v20, %v1607_v19  ;;  %v1617_v9 = vld [vmem:[%s3148_s9 + $0x90] sm:$0xff] }
 0x111   : > { %2293 = vmatpush3.bf16.msra.mxu1 %v2292_v8 }
 0x112   : > { %1926 = vmatmul.mubr.f32.gmra.mrb[10].mxu0 %v703_v18  ;;  %2294 = vmatprep.subr.bf16.mxu1 %v2448_v3  ;;  %v2325_v18 = vpack.c.bf16 %v1026_v17, %v1025_v16 }
 0x113   : > { %2266 = vmatpush3.bf16.msra.mxu0 %v2265_v23  ;;  %2001 = vmatprep.mubr.msk.f32.mxu0 %vm2449_vm0, %v2450_v11  ;;  %v1028_v23 = vld [vmem:[%s3146_s7 + $0x78] sm:$0xff] }
 0x114   : > { %2267 = vmatprep.subr.bf16.mxu0 %v2448_v3  ;;  %v2328_v24 = vpack.c.bf16 %v1028_v23, %v1027_v22 }
 0x115   : > { %2296 = vmatpush3.bf16.msra.mxu1 %v2295_v15 }
 0x116   : > { %2297 = vmatprep.subr.bf16.mxu1 %v2448_v3 }
 0x117   : > { %2269 = vmatpush3.bf16.msra.mxu0 %v2268_v26  ;;  %v1610_v26 = vld [vmem:[%s3146_s7 + $0xe8] sm:$0xff] }
 0x118   : > { %2270 = vmatprep.subr.bf16.mxu0 %v2448_v3  ;;  %v2301_v27 = vpack.c.bf16 %v1610_v26, %v1609_v25  ;;  %v1620_v25 = vld [vmem:[%s3148_s9 + $0xa8] sm:$0xff] }
 0x119   : > { %2299 = vmatpush3.bf16.msra.mxu1 %v2298_v21 }
 0x11a   : > { %2300 = vmatprep.subr.bf16.mxu1 %v2448_v3 }
 0x11b   : > { %2272 = vmatpush3.bf16.msra.mxu0 %v2271_v29  ;;  %v1612_v29 = vld [vmem:[%s3146_s7 + $0xf8] sm:$0xff] }
 0x11c   : > { %2273 = vmatprep.subr.bf16.mxu0 %v2448_v3  ;;  %v2304_v30 = vpack.c.bf16 %v1612_v29, %v1611_v28  ;;  %v1623_v29 = vld [vmem:[%s3148_s9 + $0xc0] sm:$0xff] }
 0x11d   : > { %2302 = vmatpush3.bf16.msra.mxu1 %v2301_v27  ;;  %v1621_v27 = vld [vmem:[%s3148_s9 + $0xb0] sm:$0xff] }
 0x11e   : > { %2303 = vmatprep.subr.bf16.mxu1 %v2448_v3 }
 0x11f   : > { %2275 = vmatpush3.bf16.msra.mxu0 %v2274_v32  ;;  %v1616_v32 = vld [vmem:[%s3148_s9 + $0x88] sm:$0xff] }
 0x120   : > { %2276 = vmatprep.subr.bf16.mxu0 %v2448_v3  ;;  %v2330_v33 = vpack.c.bf16 %v1616_v32, %v1615_v31  ;;  %v1625_v32 = vld [vmem:[%s3148_s9 + $0xd0] sm:$0xff] }
 0x121   : > { %2305 = vmatpush3.bf16.msra.mxu1 %v2304_v30  ;;  %v1624_v30 = vld [vmem:[%s3148_s9 + $0xc8] sm:$0xff] }
 0x122   : > { %2331 = vmatprep.subr.bf16.mxu1 %v2330_v33  ;;  %v2346_v31 = vpack.c.bf16 %v1624_v30, %v1623_v29  ;;  %v1259_v29 = vld [vmem:[%s3148_s9 + $0x78] sm:$0xff] }
 0x123   : > { %2278 = vmatpush3.bf16.msra.mxu0 %v2277_v35 }
 0x124   : > { %2279 = vmatprep.subr.bf16.mxu0 %v2448_v3 }
 0x127   : > { %2281 = vmatpush3.bf16.msra.mxu0 %v2280_v38 }
 0x128   : > { %2306 = vmatprep.subr.bf16.mxu0 %v2448_v3 }
 0x12a   : > { %2002 = vmatmul.mubr.f32.vlgmr.msra.gmra.mrb[12].mxu0 %v907_v41 }
 0x12b   : > { %2004 = vmatprep.mubr.msk.f32.mxu0 %vm2449_vm0, %v2450_v11  ;;  %2308 = vmatpush3.bf16.msra.mxu0 %v2307_v54 }
 0x12c   : > { %2309 = vmatprep.subr.bf16.mxu0 %v2448_v3 }
 0x12e   : > { %2005 = vmatmul.mubr.f32.gmra.mrb[14].mxu0 %v909_v43 }
 0x12f   : > { %2007 = vmatprep.mubr.msk.f32.mxu0 %vm2449_vm0, %v2450_v11  ;;  %2311 = vmatpush3.bf16.msra.mxu0 %v2310_v49  ;;  %v1596_v49 = vld [vmem:[%s3145_s6] ss:$0 sm:$0xff] }
 0x130   : > { %2312 = vmatprep.subr.bf16.mxu0 %v2448_v3 }
 0x132   : > { %2008 = vmatmul.mubr.f32.gmra.mrb[16].mxu0 %v908_v42 }
 0x133   : > { %2083 = vmatprep.mubr.msk.f32.mxu0 %vm2449_vm0, %v2450_v11  ;;  %2314 = vmatpush3.bf16.msra.mxu0 %v2313_v58 }
 0x134   : > { %2315 = vmatprep.subr.bf16.mxu0 %v2448_v3 }
 0x137   : > { %2317 = vmatpush3.bf16.msra.mxu0 %v2316_v0 }
 0x138   : > { %2318 = vmatprep.subr.bf16.mxu0 %v2448_v3 }
 0x13b   : > { %2320 = vmatpush3.bf16.msra.mxu0 %v2319_v7 }
 0x13c   : > { %2321 = vmatprep.subr.bf16.mxu0 %v2448_v3 }
 0x13f   : > { %2323 = vmatpush3.bf16.msra.mxu0 %v2322_v14 }
 0x140   : > { %2324 = vmatprep.subr.bf16.mxu0 %v2448_v3 }
 0x143   : > { %2326 = vmatpush3.bf16.msra.mxu0 %v2325_v18  ;;  %v2334_v18 = vpack.c.bf16 %v1618_v10, %v1617_v9 }
 0x144   : > { %2327 = vmatprep.subr.bf16.mxu0 %v2448_v3 }
 0x147   : > { %2329 = vmatpush3.bf16.msra.mxu0 %v2328_v24  ;;  %v1619_v24 = vld [vmem:[%s3148_s9 + $0xa0] sm:$0xff] }
 0x148   : > { %v2338_v26 = vpack.c.bf16 %v1620_v25, %v1619_v24  ;;  %v1255_v24 = vld [vmem:[%s3148_s9 + $0x58] sm:$0xff] }
 0x1d6   : > { %v854_v3 = vpop.f32.mrb[6].mxu1 }
 0x1d7   : > { %v1962_v34 = vpop.f32.mrb[7].mxu1 }
 0x1d8   : > { %v1627_v34 = vld [vmem:[%s3148_s9 + $0xe0] sm:$0xff] }
 0x1da   : > { %v859_v35 = vpop.f32.mrb[8].mxu1 }
 0x1db   : > { %v1965_v36 = vpop.f32.mrb[9].mxu1 }
 0x1dd   : > { %v774_v37 = vpop.f32.mrb[6].mxu0 }
 0x1de   : > { %v855_v38 = vadd.f32 %v854_v3, %v774_v37  ;;  %v1921_v39 = vpop.f32.mrb[7].mxu0  ;;  %v1629_v37 = vld [vmem:[%s3148_s9 + $0xf0] sm:$0xff] }
 0x1df   : > { %v864_v40 = vpop.f32.mrb[10].mxu1 }
 0x1e0   : > { %v1968_v41 = vpop.f32.mrb[11].mxu1  ;;  %v875_v48 = vadd.f32 %v1595_v45, %v855_v38  ;;  %v1630_v38 = vld [vmem:[%s3148_s9 + $0xf8] sm:$0xff] }
 0x1e1   : > { %v779_v42 = vpop.f32.mrb[8].mxu0  ;;  %v2358_v39 = vpack.c.bf16 %v1630_v38, %v1629_v37  ;;  %v1245_v41 = vld [vmem:[%s3148_s9 + $0x8] sm:$0xff] }
 0x1e2   : > { %v860_v43 = vadd.f32 %v859_v35, %v779_v42  ;;  %v1924_v46 = vpop.f32.mrb[9].mxu0  ;;  %v878_v52 = vmax.f32 %v875_v48, 0.0  ;;  %v1628_v35 = vld [vmem:[%s3148_s9 + $0xe8] sm:$0xff] }
 0x1e3   : > { %v2354_v36 = vpack.c.bf16 %v1628_v35, %v1627_v34 }
 0x1e4   : > { %v876_v53 = vadd.f32 %v1595_v45, %v860_v43 }
 0x1e5   : > { %v784_v47 = vpop.f32.mrb[10].mxu0 }
 0x1e6   : > { %v865_v54 = vadd.f32 %v864_v40, %v784_v47  ;;  %v1927_v44 = vpop.f32.mrb[11].mxu0  ;;  %v879_v59 = vmax.f32 %v876_v53, 0.0  ;;  %v1244_v40 = vld [vmem:[%s3148_s9] sm:$0xff] }
 0x1e7   : > { %v2362_v42 = vpack.c.bf16 %v1245_v41, %v1244_v40 }
 0x1e8   : > { %v877_v60 = vadd.f32 %v1595_v45, %v865_v54  ;;  %v1614_v45 = vld [vmem:[%s3147_s8] ss:$0 sm:$0xff] }
 0x1ea   : > { %v880_v4 = vmax.f32 %v877_v60, 0.0 }
 0x1fd   : > { %v979_v51 = vpop.f32.mrb[12].mxu0 }
 0x1fe   : > { %v980_v55 = vadd.f32 %v1596_v49, %v979_v51  ;;  %v2003_v56 = vpop.f32.mrb[13].mxu0 }
 0x200   : > { %v993_v57 = vadd.f32 %v980_v55, %v878_v52 }
 0x201   : > { %v984_v58 = vpop.f32.mrb[14].mxu0 }
 0x202   : > { %v996_v61 = vmax.f32 %v993_v57, 0.0  ;;  %v985_v62 = vadd.f32 %v1596_v49, %v984_v58  ;;  %v2006_v63 = vpop.f32.mrb[15].mxu0 }
 0x204   : > { %v1010_v0 = vsel %vm1001_vm4, %v996_v61, 0.0  ;;  %v994_v1 = vadd.f32 %v985_v62, %v879_v59  ;;  %2084 = vmatmul.mubr.msk.f32.vlgmr.msra.gmra.mrb[18].mxu0 %vm1001_vm4, %v996_v61 }
 0x205   : > { %v989_v2 = vpop.f32.mrb[16].mxu0  ;;  %2086 = vmatprep.mubr.msk.f32.mxu0 %vm2449_vm0, %v2450_v11  ;;  %v1049_v8 = vrot.slane %v1010_v0, 2  ;;  %v1449_v12 = vrot.slane %v1010_v0, 4 }
 0x206   : > { %v997_v5 = vmax.f32 %v994_v1, 0.0  ;;  %v990_v6 = vadd.f32 %v1596_v49, %v989_v2  ;;  %v2009_v7 = vpop.f32.mrb[17].mxu0 }
 0x207   : > { %v1246_v7 = vld [vmem:[%s3148_s9 + $0x10] sm:$0xff] }
 0x208   : > { %v1050_v13 = vrot.slane %v997_v5, 2  ;;  %v1450_v14 = vrot.slane %v997_v5, 4  ;;  %v995_v15 = vadd.f32 %v990_v6, %v880_v4  ;;  %2087 = vmatmul.mubr.f32.gmra.mrb[20].mxu0 %v997_v5 }
 0x209   : > { %2089 = vmatprep.mubr.msk.f32.mxu0 %vm2449_vm0, %v2450_v11 }
 0x20a   : > { %v998_v16 = vmax.f32 %v995_v15, 0.0  ;;  %v1051_v17 = vsel %vm904_vm3, %v1049_v8, %v1050_v13  ;;  %v3017_v19 = vsel %vm1448_vm5, %v1449_v12, %v1450_v14  ;;  %v1247_v8 = vld [vmem:[%s3148_s9 + $0x18] sm:$0xff] }
 0x20b   : > { %2043 = vmatmul.mubr.f32.vlgmr.msra.gmra.mrb[12].mxu1 %v1051_v17  ;;  %v2366_v10 = vpack.c.bf16 %v1247_v8, %v1246_v7  ;;  %v1251_v17 = vld [vmem:[%s3148_s9 + $0x38] sm:$0xff] }
 0x20c   : > { %v1452_v20 = vrot.slane %v998_v16, 4  ;;  %2090 = vmatmul.mubr.f32.gmra.mrb[22].mxu0 %v998_v16  ;;  %2045 = vmatprep.mubr.msk.f32.mxu1 %vm2449_vm0, %v2450_v11  ;;  %v1052_v21 = vrot.slane %v998_v16, 2  ;;  %v1250_v16 = vld [vmem:[%s3148_s9 + $0x30] sm:$0xff] }
 0x20d   : > { %2333 = vmatpush3.bf16.msra.mxu1 %v2330_v33  ;;  %v1626_v33 = vld [vmem:[%s3148_s9 + $0xd8] sm:$0xff] }
 0x20e   : > { %v1053_v22 = vsel %vm904_vm3, %v1050_v13, %v1052_v21  ;;  %2335 = vmatprep.subr.bf16.mxu1 %v2334_v18  ;;  %v3023_v23 = vsel %vm1448_vm5, %v1450_v14, %v1452_v20  ;;  %v2350_v3 = vpack.c.bf16 %v1626_v33, %v1625_v32  ;;  %v1248_v13 = vld [vmem:[%s3148_s9 + $0x20] sm:$0xff]  ;;  %v1249_v14 = vld [vmem:[%s3148_s9 + $0x28] sm:$0xff] }
 0x20f   : > { %2046 = vmatmul.mubr.f32.gmra.mrb[14].mxu1 %v1053_v22  ;;  %v2370_v15 = vpack.c.bf16 %v1249_v14, %v1248_v13  ;;  %v1252_v20 = vld [vmem:[%s3148_s9 + $0x40] sm:$0xff]  ;;  %v1254_v22 = vld [vmem:[%s3148_s9 + $0x50] sm:$0xff] }
 0x210   : > { %2048 = vmatprep.mubr.msk.f32.mxu1 %vm2449_vm0, %v2450_v11  ;;  %v1622_v11 = vld [vmem:[%s3148_s9 + $0xb8] sm:$0xff]  ;;  %v2382_v25 = vpack.c.bf16 %v1255_v24, %v1254_v22 }
 0x211   : > { %2337 = vmatpush3.bf16.msra.mxu1 %v2334_v18  ;;  %v2342_v28 = vpack.c.bf16 %v1622_v11, %v1621_v27  ;;  %v2374_v18 = vpack.c.bf16 %v1251_v17, %v1250_v16  ;;  %v1257_v27 = vld [vmem:[%s3148_s9 + $0x68] sm:$0xff] }
 0x212   : > { %2339 = vmatprep.subr.bf16.mxu1 %v2338_v26 }
 0x213   : > { %2049 = vmatmul.mubr.f32.gmra.mrb[16].mxu1 %v1052_v21  ;;  %v2378_v21 = vpack.c.bf16 %v1253_v50, %v1252_v20 }
 0x215   : > { %2341 = vmatpush3.bf16.msra.mxu1 %v2338_v26  ;;  %v1256_v26 = vld [vmem:[%s3148_s9 + $0x60] sm:$0xff] }
 0x216   : > { %2343 = vmatprep.subr.bf16.mxu1 %v2342_v28  ;;  %v2386_v11 = vpack.c.bf16 %v1257_v27, %v1256_v26 }
 0x219   : > { %2345 = vmatpush3.bf16.msra.mxu1 %v2342_v28  ;;  %v1258_v28 = vld [vmem:[%s3148_s9 + $0x70] sm:$0xff] }
 0x21a   : > { %2347 = vmatprep.subr.bf16.mxu1 %v2346_v31  ;;  %v2390_v30 = vpack.c.bf16 %v1259_v29, %v1258_v28 }
 0x21d   : > { %2349 = vmatpush3.bf16.msra.mxu1 %v2346_v31  ;;  %v1632_v31 = vld [vmem:[%s3149_s10] ss:$0 sm:$0xff] }
 0x21e   : > { %2351 = vmatprep.subr.bf16.mxu1 %v2350_v3 }
 0x221   : > { %2353 = vmatpush3.bf16.msra.mxu1 %v2350_v3 }
 0x222   : > { %2355 = vmatprep.subr.bf16.mxu1 %v2354_v36 }
 0x225   : > { %2357 = vmatpush3.bf16.msra.mxu1 %v2354_v36 }
 0x226   : > { %2359 = vmatprep.subr.bf16.mxu1 %v2358_v39 }
 0x229   : > { %2361 = vmatpush3.bf16.msra.mxu1 %v2358_v39 }
 0x22a   : > { %2363 = vmatprep.subr.bf16.mxu1 %v2362_v42 }
 0x2d7   : > { %v1203_v43 = vpop.f32.mrb[18].mxu0 }
 0x2d8   : > { %v2085_v46 = vpop.f32.mrb[19].mxu0 }
 0x2db   : > { %v1208_v47 = vpop.f32.mrb[20].mxu0 }
 0x2dc   : > { %v2088_v54 = vpop.f32.mrb[21].mxu0 }
 0x2de   : > { %v1123_v44 = vpop.f32.mrb[12].mxu1 }
 0x2df   : > { %v1204_v48 = vadd.f32 %v1203_v43, %v1123_v44  ;;  %v2044_v49 = vpop.f32.mrb[13].mxu1  ;;  %v1213_v51 = vpop.f32.mrb[22].mxu0 }
 0x2e0   : > { %v2091_v52 = vpop.f32.mrb[23].mxu0 }
 0x2e1   : > { %v1224_v53 = vadd.f32 %v1614_v45, %v1204_v48 }
 0x2e2   : > { %v1128_v55 = vpop.f32.mrb[14].mxu1 }
 0x2e3   : > { %v1227_v56 = vmax.f32 %v1224_v53, 0.0  ;;  %v1209_v57 = vadd.f32 %v1208_v47, %v1128_v55  ;;  %v2047_v58 = vpop.f32.mrb[15].mxu1 }
 0x2e5   : > { %v1225_v59 = vadd.f32 %v1614_v45, %v1209_v57  ;;  %v1241_v60 = vsel %vm1232_vm6, %v1227_v56, 0.0 }
 0x2e6   : > { %v1133_v61 = vpop.f32.mrb[16].mxu1  ;;  %v1280_v1 = vrot.slane %v1241_v60, 2 }
 0x2e7   : > { %v1228_v62 = vmax.f32 %v1225_v59, 0.0  ;;  %v1214_v63 = vadd.f32 %v1213_v51, %v1133_v61  ;;  %v2050_v0 = vpop.f32.mrb[17].mxu1 }
 0x2e9   : > { %v1281_v2 = vrot.slane %v1228_v62, 2  ;;  %v1226_v4 = vadd.f32 %v1614_v45, %v1214_v63 }
 0x2eb   : > { %v1229_v5 = vmax.f32 %v1226_v4, 0.0  ;;  %v1282_v6 = vsel %vm904_vm3, %v1280_v1, %v1281_v2 }
 0x2ec   : > { %2124 = vmatprep.mubr.f32.mxu1 %v1282_v6 }
 0x2ed   : > { %v1283_v9 = vrot.slane %v1229_v5, 2 }
 0x2ef   : > { %v1284_v12 = vsel %vm904_vm3, %v1281_v2, %v1283_v9 }
 0x2f0   : > { %2125 = vmatmul.mubr.f32.vlgmr.msra.gmra.mrb[18].mxu1 %v1284_v12 }
 0x2f1   : > { %2365 = vmatpush3.bf16.msra.mxu1 %v2362_v42  ;;  %2159 = vmatprep.mubr.msk.f32.mxu1 %vm1232_vm6, %v1227_v56 }
 0x2f2   : > { %2367 = vmatprep.subr.bf16.mxu1 %v2366_v10 }
 0x2f5   : > { %2369 = vmatpush3.bf16.msra.mxu1 %v2366_v10 }
 0x2f6   : > { %2371 = vmatprep.subr.bf16.mxu1 %v2370_v15 }
 0x2f9   : > { %2373 = vmatpush3.bf16.msra.mxu1 %v2370_v15 }
 0x2fa   : > { %2375 = vmatprep.subr.bf16.mxu1 %v2374_v18 }
 0x2fd   : > { %2377 = vmatpush3.bf16.msra.mxu1 %v2374_v18 }
 0x2fe   : > { %2379 = vmatprep.subr.bf16.mxu1 %v2378_v21 }
 0x301   : > { %2381 = vmatpush3.bf16.msra.mxu1 %v2378_v21 }
 0x302   : > { %2383 = vmatprep.subr.bf16.mxu1 %v2382_v25 }
 0x305   : > { %2385 = vmatpush3.bf16.msra.mxu1 %v2382_v25 }
 0x306   : > { %2387 = vmatprep.subr.bf16.mxu1 %v2386_v11 }
 0x309   : > { %2389 = vmatpush3.bf16.msra.mxu1 %v2386_v11 }
 0x30a   : > { %2391 = vmatprep.subr.bf16.mxu1 %v2390_v30 }
 0x30d   : > { %2393 = vmatpush3.bf16.msra.mxu1 %v2390_v30 }
 0x310   : > { %2160 = vmatmul.mubr.f32.vlgmr.msra.gmra.mrb[18].mxu1 %v1228_v62 }
 0x3e3   : > { %v2161_v32 = vpop.f32.mrb[18].mxu1 }
 0x3e4   : > { %v1445_v33 = vadd.f32 %v2161_v32, %v1632_v31  ;;  %v1428_v3 = vpop.f32.mrb[19].mxu1 }
 0x3e5   : > { %v1444_v34 = vadd.f32 %v1632_v31, %v1428_v3 }
 0x3e6   : > { %v1447_v35 = vmax.f32 %v1445_v33, 0.0 }
 0x3e7   : > { %v1446_v36 = vmax.f32 %v1444_v34, 0.0 }
 0x3e8   : > { %v1457_v37 = vadd.f32 %v3023_v23, %v1447_v35 }
 0x3e9   : > { %v1456_v38 = vadd.f32 %v3017_v19, %v1446_v36 }
 0x3ea   : > { %v1459_v39 = vmax.f32 %v1457_v37, 0.0 }
 0x3eb   : > { %v1458_v40 = vmax.f32 %v1456_v38, 0.0 }
 0x3ec   : > { %1462 = vst.msk [vmem:[%s422_s26 + $0x8] sm:$0xff] %vm1460_vm7, %v1459_v39 }
 0x3ed   : > { %1461 = vst.msk [vmem:[%s422_s26] sm:$0xff] %vm1460_vm7, %v1458_v40 }
 0x3ee PF: > { %s21_s19 = sadd.s32 1, %s2446_s19   ;;  %s3151_s17 = smov %s2442_s18 }
 0x3ef   : > { %p18_p5 = scmp.ge.s32.totalorder %s21_s19, 4   ;;  %s3152_s18 = smov %s3154_s20 }
 0x3f1   :  { %20 = sbr.rel (!%p18_p5) target bundleno = 2 (0x2), region = 98 }

</bundles_post_ra>
